<compile_context>
chip_gen: v5e
topology: v5e:2x2
jax: 0.10.0
libtpu: 0.0.40
codegen_flags: <defaults>
</compile_context>

<pallas_src>
import functools

import jax
import jax.numpy as jnp
from jax.experimental import pallas as pl
from jax.experimental.pallas import tpu as pltpu


HIDDEN = 128


def _cdiv(a, b):
    return -(-a // b)


def _round_up(n, m):
    return _cdiv(n, m) * m


def _default_act_dtype():
    """bf16 elementwise math only where the VPU/EUP support it (v6e / v7x)."""
    try:
        kind = jax.devices()[0].device_kind.lower()
    except Exception:
        return jnp.float32
    if ("v6" in kind) or ("v7" in kind) or ("7x" in kind):
        return jnp.bfloat16
    return jnp.float32   # v5e and older: no bf16 VPU/EUP, keep f32 elementwise


def _pick_tiling(B, max_tb):
    """Padded batch size + lane tile.

    Keeps >= 2 grid steps when the batch allows it (v7x has 2 TensorCores and
    the grid axis is marked "parallel"), and avoids padding when possible.
    """
    Bp = _round_up(max(B, 128), 128)       # lane granularity
    if Bp <= max_tb:
        if Bp >= 256 and (Bp // 2) % 128 == 0:
            tb = Bp // 2                   # 2 grid steps, zero pad
        else:
            tb = Bp                        # single step, zero pad
    else:
        n_steps = _cdiv(Bp, max_tb)
        tb = _round_up(_cdiv(Bp, n_steps), 128)
    Bp = _round_up(Bp, tb)
    return Bp, tb


def mlp_kernel(x_ref, w1_ref, b1_ref, w2_ref, b2_ref, w3_ref, b3_ref, o_ref,
               *, act_dtype):
    # x_ref: (2, tb) f32, batch in lanes.
    x = x_ref[...]

    # fc1 (in=2): two broadcast multiply-adds on the VPU, no MXU pass.
    h1 = (w1_ref[:, 0:1] * x[0:1, :]
          + w1_ref[:, 1:2] * x[1:2, :]
          + b1_ref[...])                                    # (128, tb) f32
    h1 = jnp.tanh(h1.astype(act_dtype))                     # tanh in act_dtype

    # fc2 (128x128): the only MXU matmul; bf16 operands, f32 accumulation.
    h2 = jnp.dot(w2_ref[...], h1.astype(jnp.bfloat16),
                 preferred_element_type=jnp.float32)        # (128, tb) f32
    h2 = jnp.tanh(h2.astype(act_dtype) + b2_ref[...])       # bias + tanh

    # fc3 (out=1): VPU multiply + sublane reduce -> lane-dense (1, tb) row.
    out = jnp.sum(h2 * w3_ref[...], axis=0, keepdims=True)  # (1, tb) f32
    o_ref[...] = (out + b3_ref[0]).astype(o_ref.dtype)


def net_forward(x, params, *, max_tb=4096, act_dtype=None):
    """Forward pass of `Net`.  x: (B, 2) float32, params in PyTorch (out, in) layout."""
    if act_dtype is None:
        act_dtype = _default_act_dtype()

    B = x.shape[0]
    Bp, tb = _pick_tiling(B, max_tb)

    # Batch-in-lanes: x enters the kernel as (2, Bp) -> lane-dense input DMA.
    xT = x.T
    if Bp != B:
        # Tile selection above keeps this pad small / usually zero.  For large
        # ragged batches a masked tail store would avoid the pad entirely.
        xT = jnp.pad(xT, ((0, 0), (0, Bp - B)))

    w1 = params["w1"]                                   # (128, 2)   (out, in)
    b1 = params["b1"].reshape(HIDDEN, 1)                # (128, 1)
    w2 = params["w2"].astype(jnp.bfloat16)              # (128, 128) (out, in)
    b2 = params["b2"].reshape(HIDDEN, 1).astype(act_dtype)
    w3 = params["w3"].reshape(HIDDEN, 1)                # (128, 1) column
    b3 = params["b3"].reshape(1)                        # scalar in SMEM

    grid = (Bp // tb,)
    flops = 2 * Bp * (2 * HIDDEN + HIDDEN * HIDDEN + HIDDEN)
    bytes_accessed = (Bp * (2 + 1) * 4                   # x in, y out
                      + w1.size * 4 + b1.size * 4
                      + w2.size * 2 + b2.size * b2.dtype.itemsize
                      + w3.size * 4 + 4)

    out = pl.pallas_call(
        functools.partial(mlp_kernel, act_dtype=act_dtype),
        out_shape=jax.ShapeDtypeStruct((1, Bp), jnp.float32),
        grid=grid,
        in_specs=[
            pl.BlockSpec((2, tb), lambda i: (0, i)),             # x, batch-tiled
            pl.BlockSpec((HIDDEN, 2), lambda i: (0, 0)),         # w1 (resident)
            pl.BlockSpec((HIDDEN, 1), lambda i: (0, 0)),         # b1
            pl.BlockSpec((HIDDEN, HIDDEN), lambda i: (0, 0)),    # w2 (bf16)
            pl.BlockSpec((HIDDEN, 1), lambda i: (0, 0)),         # b2
            pl.BlockSpec((HIDDEN, 1), lambda i: (0, 0)),         # w3 column
            pl.BlockSpec(memory_space=pltpu.MemorySpace.SMEM),   # b3 scalar
        ],
        out_specs=pl.BlockSpec((1, tb), lambda i: (0, i)),       # lane-dense out
        compiler_params=pltpu.CompilerParams(
            dimension_semantics=("parallel",),
            vmem_limit_bytes=32 * 1024 * 1024),
        cost_estimate=pl.CostEstimate(
            flops=flops,
            transcendentals=2 * HIDDEN * Bp,
            bytes_accessed=bytes_accessed),
    )(xT, w1, b1, w2, b2, w3, b3)

    return out.reshape(Bp, 1)[:B]


def init_params(key):
    """nn.Linear-style U(-1/sqrt(fan_in), 1/sqrt(fan_in)) init, PyTorch (out, in) layout."""
    ks = jax.random.split(key, 6)

    def linear(kw, kb, fan_in, fan_out):
        bound = 1.0 / jnp.sqrt(jnp.float32(fan_in))
        w = jax.random.uniform(kw, (fan_out, fan_in), jnp.float32, -bound, bound)
        b = jax.random.uniform(kb, (fan_out,), jnp.float32, -bound, bound)
        return w, b

    w1, b1 = linear(ks[0], ks[1], 2, HIDDEN)
    w2, b2 = linear(ks[2], ks[3], HIDDEN, HIDDEN)
    w3, b3 = linear(ks[4], ks[5], HIDDEN, 1)
    return {"w1": w1, "b1": b1, "w2": w2, "b2": b2, "w3": w3, "b3": b3}


if __name__ == "__main__":
    key = jax.random.PRNGKey(0)
    pkey, xkey = jax.random.split(key)
    params = init_params(pkey)

    B = 512  # small batch -> 2-step "parallel" grid (tb = 256)
    x = jax.random.normal(xkey, (B, 2), dtype=jnp.float32)

    fwd = jax.jit(net_forward)   # fuses the wrapper-side transpose/pad
    y = jax.block_until_ready(fwd(x, params))
    assert y.shape == (B, 1)

    # Reference: the all-f32 PyTorch forward.  bf16 on the MXU (and bf16
    # tanh/bias on v6e/v7x) costs ~1e-2 absolute error at most here — an
    # intentional accuracy/perf trade-off, not a bug.
    h = jnp.tanh(x @ params["w1"].T + params["b1"])
    h = jnp.tanh(h @ params["w2"].T + params["b2"])
    ref = h @ params["w3"].T + params["b3"]
    err = jnp.max(jnp.abs(y - ref))
    assert err < 5e-2, f"max abs error {err}"

    print("KERNEL_OK")
</pallas_src>

<mosaic_0001>
module attributes {stable_mosaic.version = 11 : i64} {
  func.func @mlp_kernel(%arg0: i32, %arg1: memref<2x256xf32, #tpu.memory_space<vmem>>, %arg2: memref<128x2xf32, #tpu.memory_space<vmem>>, %arg3: memref<128x1xf32, #tpu.memory_space<vmem>>, %arg4: memref<128x128xbf16, #tpu.memory_space<vmem>>, %arg5: memref<128x1xf32, #tpu.memory_space<vmem>>, %arg6: memref<128x1xf32, #tpu.memory_space<vmem>>, %arg7: memref<1xf32, #tpu.memory_space<smem>>, %arg8: memref<1x256xf32, #tpu.memory_space<vmem>>) attributes {dimension_semantics = [#tpu.dimension_semantics<parallel>], iteration_bounds = array<i64: 2>, scalar_prefetch = 0 : i64, scratch_operands = 0 : i64, tpu.core_type = #tpu.core_type<tc>, window_params = [{transform_indices = @transform_0, window_bounds = array<i64: 2, 256>}, {pipeline_mode = #tpu.pipeline_mode<synchronous>, transform_indices = @transform_1, window_bounds = array<i64: 128, 2>}, {pipeline_mode = #tpu.pipeline_mode<synchronous>, transform_indices = @transform_2, window_bounds = array<i64: 128, 1>}, {pipeline_mode = #tpu.pipeline_mode<synchronous>, transform_indices = @transform_3, window_bounds = array<i64: 128, 128>}, {pipeline_mode = #tpu.pipeline_mode<synchronous>, transform_indices = @transform_4, window_bounds = array<i64: 128, 1>}, {pipeline_mode = #tpu.pipeline_mode<synchronous>, transform_indices = @transform_5, window_bounds = array<i64: 128, 1>}, {transform_indices = @transform_6, window_bounds = array<i64: 1>}, {transform_indices = @transform_7, window_bounds = array<i64: 1, 256>}]} {
    %c0 = arith.constant 0 : index
    %c0_0 = arith.constant 0 : index
    %0 = vector.load %arg1[%c0, %c0_0] : memref<2x256xf32, #tpu.memory_space<vmem>>, vector<2x256xf32>
    %c0_1 = arith.constant 0 : index
    %c0_2 = arith.constant 0 : index
    %1 = vector.load %arg2[%c0_1, %c0_2] : memref<128x2xf32, #tpu.memory_space<vmem>>, vector<128x1xf32>
    %2 = vector.extract_strided_slice %0 {offsets = [0, 0], sizes = [1, 256], strides = [1, 1]} : vector<2x256xf32> to vector<1x256xf32>
    %3 = vector.broadcast %1 : vector<128x1xf32> to vector<128x256xf32>
    %4 = vector.broadcast %2 : vector<1x256xf32> to vector<128x256xf32>
    %5 = arith.mulf %3, %4 : vector<128x256xf32>
    %c0_3 = arith.constant 0 : index
    %c1 = arith.constant 1 : index
    %6 = vector.load %arg2[%c0_3, %c1] : memref<128x2xf32, #tpu.memory_space<vmem>>, vector<128x1xf32>
    %7 = vector.extract_strided_slice %0 {offsets = [1, 0], sizes = [1, 256], strides = [1, 1]} : vector<2x256xf32> to vector<1x256xf32>
    %8 = vector.broadcast %6 : vector<128x1xf32> to vector<128x256xf32>
    %9 = vector.broadcast %7 : vector<1x256xf32> to vector<128x256xf32>
    %10 = arith.mulf %8, %9 : vector<128x256xf32>
    %11 = arith.addf %5, %10 : vector<128x256xf32>
    %c0_4 = arith.constant 0 : index
    %c0_5 = arith.constant 0 : index
    %12 = vector.load %arg3[%c0_4, %c0_5] : memref<128x1xf32, #tpu.memory_space<vmem>>, vector<128x1xf32>
    %13 = vector.broadcast %12 : vector<128x1xf32> to vector<128x256xf32>
    %14 = arith.addf %11, %13 : vector<128x256xf32>
    %15 = math.tanh %14 : vector<128x256xf32>
    %c0_6 = arith.constant 0 : index
    %c0_7 = arith.constant 0 : index
    %16 = vector.load %arg4[%c0_6, %c0_7] : memref<128x128xbf16, #tpu.memory_space<vmem>>, vector<128x128xbf16>
    %17 = arith.truncf %15 : vector<128x256xf32> to vector<128x256xbf16>
    %cst = arith.constant dense<0.000000e+00> : vector<128x256xf32>
    %18 = tpu.matmul %16, %17, %cst {dimension_numbers = #tpu.dot_dimension_numbers<[1], [0], [0], [1], [0, 0, 1, 1], [], []>} : vector<128x128xbf16>, vector<128x256xbf16>, vector<128x256xf32> -> vector<128x256xf32>
    %c0_8 = arith.constant 0 : index
    %c0_9 = arith.constant 0 : index
    %19 = vector.load %arg5[%c0_8, %c0_9] : memref<128x1xf32, #tpu.memory_space<vmem>>, vector<128x1xf32>
    %20 = vector.broadcast %19 : vector<128x1xf32> to vector<128x256xf32>
    %21 = arith.addf %18, %20 : vector<128x256xf32>
    %22 = math.tanh %21 : vector<128x256xf32>
    %c0_10 = arith.constant 0 : index
    %c0_11 = arith.constant 0 : index
    %23 = vector.load %arg6[%c0_10, %c0_11] : memref<128x1xf32, #tpu.memory_space<vmem>>, vector<128x1xf32>
    %24 = vector.broadcast %23 : vector<128x1xf32> to vector<128x256xf32>
    %25 = arith.mulf %22, %24 : vector<128x256xf32>
    %cst_12 = arith.constant dense<0.000000e+00> : vector<256xf32>
    %26 = vector.multi_reduction <add>, %25, %cst_12 [0] : vector<128x256xf32> to vector<256xf32>
    %27 = vector.shape_cast %26 : vector<256xf32> to vector<1x256xf32>
    %c0_13 = arith.constant 0 : index
    %28 = memref.load %arg7[%c0_13] : memref<1xf32, #tpu.memory_space<smem>>
    %29 = vector.broadcast %28 : f32 to vector<1x256xf32>
    %30 = arith.addf %27, %29 : vector<1x256xf32>
    %c0_14 = arith.constant 0 : index
    %c0_15 = arith.constant 0 : index
    %31 = vector.load %arg8[%c0_14, %c0_15] : memref<1x256xf32, #tpu.memory_space<vmem>>, vector<1x256xf32>
    tpu.vector_store %arg8[%c0_14, %c0_15], %30 {strides = array<i32>} : memref<1x256xf32, #tpu.memory_space<vmem>>, vector<1x256xf32>,
    return
  }
  func.func @transform_0(%arg0: i32) -> (i32, i32) {
    %c0_i32 = arith.constant 0 : i32
    %c0_i32_0 = arith.constant 0 : i32
    return %c0_i32, %arg0 : i32, i32
  }
  func.func @transform_1(%arg0: i32) -> (i32, i32) {
    %c0_i32 = arith.constant 0 : i32
    %c0_i32_0 = arith.constant 0 : i32
    %c0_i32_1 = arith.constant 0 : i32
    return %c0_i32, %c0_i32_0 : i32, i32
  }
  func.func @transform_2(%arg0: i32) -> (i32, i32) {
    %c0_i32 = arith.constant 0 : i32
    %c0_i32_0 = arith.constant 0 : i32
    %c0_i32_1 = arith.constant 0 : i32
    return %c0_i32, %c0_i32_0 : i32, i32
  }
  func.func @transform_3(%arg0: i32) -> (i32, i32) {
    %c0_i32 = arith.constant 0 : i32
    %c0_i32_0 = arith.constant 0 : i32
    %c0_i32_1 = arith.constant 0 : i32
    return %c0_i32, %c0_i32_0 : i32, i32
  }
  func.func @transform_4(%arg0: i32) -> (i32, i32) {
    %c0_i32 = arith.constant 0 : i32
    %c0_i32_0 = arith.constant 0 : i32
    %c0_i32_1 = arith.constant 0 : i32
    return %c0_i32, %c0_i32_0 : i32, i32
  }
  func.func @transform_5(%arg0: i32) -> (i32, i32) {
    %c0_i32 = arith.constant 0 : i32
    %c0_i32_0 = arith.constant 0 : i32
    %c0_i32_1 = arith.constant 0 : i32
    return %c0_i32, %c0_i32_0 : i32, i32
  }
  func.func @transform_6(%arg0: i32) -> i32 {
    %c0_i32 = arith.constant 0 : i32
    %c0_i32_0 = arith.constant 0 : i32
    return %c0_i32 : i32
  }
  func.func @transform_7(%arg0: i32) -> (i32, i32) {
    %c0_i32 = arith.constant 0 : i32
    %c0_i32_0 = arith.constant 0 : i32
    return %c0_i32, %arg0 : i32, i32
  }
}

</mosaic_0001>

<bundles_post_ra>
// kernel: net_forward.1
= control target key start
LH: loop header
LB: loop body
LE: loop exit
PB: predicated region body
PF: predicated region fallthrough
CT: control target
= control target key end

     0   :  { %s2208_s0 = inlined_call_operand.vmem [shape: f32[2,512], index: 0, kind: input, shape index: {}]   ;;  %s2209_s1 = inlined_call_operand.vmem [shape: f32[128,2], index: 1, kind: input, shape index: {}]   ;;  %s2210_s2 = inlined_call_operand.vmem [shape: f32[128,1], index: 2, kind: input, shape index: {}]   ;;  %s2211_s3 = inlined_call_operand.vmem [shape: bf16[128,128], index: 3, kind: input, shape index: {}]   ;;  %s2212_s4 = inlined_call_operand.vmem [shape: f32[128,1], index: 4, kind: input, shape index: {}]   ;;  %s2213_s5 = inlined_call_operand.vmem [shape: f32[128,1], index: 5, kind: input, shape index: {}]   ;;  %s2214_s6 = inlined_call_operand.<no memory space> [shape: f32[1], index: 6, kind: input, shape index: {}]   ;;  %s2215_s7 = inlined_call_operand.hbm [shape: f32[1,512], index: 7, kind: output, shape index: {}]  }
   0x1   :  { %12 = sst [smem:[#allocation2]] %s2214_s6 }
   0x2   :  { %13 = vsyncpa [#allocation4], 0 }
   0x3   :  { %15 = vsyncpa [#allocation4 + $0x1], 0  ;;  %s1630_s26 = smov 0   ;;  %s1632_s27 = smov 0  }
   0x4   :  { %s1634_s28 = smov 0   ;;  %s1636_s29 = smov 0  }
   0x5 LB: > { %s1276_s6 = sadd.s32 4294967295, %s1583_s29   ;;  %s1277_s30 = sadd.s32 4294967294, %s1583_s29   ;;  %s1583_s29 = sphi %s1636_s29, %s2221_s29   ;;  %s1579_s28 = sphi %s1634_s28, %s2220_s28   ;;  %s1575_s27 = sphi %s1632_s27, %s2219_s27   ;;  %s1571_s26 = sphi %s1630_s26, %s2218_s26  }
   0x6   : > { %s1653_s8 = sadd.s32 1, %s1583_s29   ;;  %s180_s9 = sadd.s32 1, %s1579_s28 }
   0x7   : > { %s177_s10 = ssub.s32 %s1583_s29, %s1653_s8  ;;  %p190_p0 = scmp.ne.s32.totalorder %s1579_s28, %s1575_s27 }
   0x8   : > { %p178_p1 = scmp.eq.s32.totalorder %s177_s10, 0  ;;  %p191_p2 = scmp.eq.s32.totalorder %s1276_s6, 1 }
   0x9   : > { %p196_p3 = scmp.ne.s32.totalorder %s1575_s27, %s1571_s26  ;;  %p197_p4 = scmp.eq.s32.totalorder %s1277_s30, 1 }
   0xa   : > { %s1665_s11 = scalar_select %p178_p1, %s1579_s28, %s180_s9  }
   0xb   : > { %p1667_p5 = por %p191_p2, %p190_p0  ;;  %p1671_p6 = por %p197_p4, %p196_p3 }
   0xc   : > { %p1280_p7 = scmp.ge.s32.totalorder %s1583_s29, 1  ;;  %p242_p8 = scmp.lt.s32.totalorder %s1583_s29, 3 }
   0xe   : > { %p243_p9 = pnand %p1280_p7, %p242_p8 }
   0xf   : > { %s1733_s20 = sshll.u32 (!%p243_p9), %s1276_s6, 1  ;;  %s1187_s10 = sld [smem:[#allocation2]] (!%p243_p9) }
  0x10   : > { %246 = sbr.rel (%p243_p9) target bundleno = 515 (0x203), region = 48  ;;  %p275_p10 = scmp.lt.s32.totalorder (!%p243_p9), %s1733_s20, 3 }
  0x11   : > { %s271_s14 = sand.u32 (!%p243_p9), 1, %s1575_s27   ;;  %s1213_s18 = scalar_lea.hbm (!%p243_p9), %s2215_s7, %s1733_s20 }
  0x12   : > { %s1281_s15 = sshll.u32 (!%p243_p9), %s271_s14, 1  ;;  %s1217_s22 = sshll.u32 (!%p243_p9), %s1213_s18, 4  ;;  %s1218_s22 = int_to_ptr.hbm [resolvable:$true] %s1217_s22 }
  0x13   : > { %s1203_s23 = scalar_lea.sflag (!%p243_p9), [#allocation4], %s271_s14  ;;  %s1535_s24 = sshra.s32 (!%p243_p9), %s1218_s22, 4  ;;  %s1536_s24 = int_to_ptr.hbm [resolvable:$true] %s1535_s24 }
  0x14   : > { %p1542_p0 = scmp.lt.s32.totalorder (!%p243_p9), %s1536_s24, %s2215_s7 }
  0x15   : > { %v286_v0 = vld [vmem:[%s2209_s1 + $0x20] sm:$0xff]  ;;  %v284_v1 = vld [vmem:[%s2209_s1 + $0x10] sm:$0xff]  ;;  %v1585_v2 = vmov 1   ;;  %v1586_v3 = vmov 0   ;;  %v287_v4 = vld [vmem:[%s2209_s1 + $0x28] sm:$0xff]  ;;  %s276_s6 = scalar_select %p275_p10, %s1733_s20, 3 }
  0x16   : > { %1389 = vset.pattern.permute.xlu0 %v1585_v2  ;;  %1386 = vset.pattern.permute.xlu2 %v1586_v3  ;;  %v289_v5 = vld [vmem:[%s2209_s1 + $0x38] sm:$0xff]  ;;  %v290_v7 = vld [vmem:[%s2209_s1 + $0x40] sm:$0xff]  ;;  %v292_v8 = vld [vmem:[%s2209_s1 + $0x50] sm:$0xff]  ;;  %vm1194_vm0 = vcmask 1040384   ;;  %s1537_s20 = scalar_lea.hbm %s1536_s24, 2 }
  0x17   : > { %1385 = vset.pattern.permute.xlu1 %v1586_v3  ;;  %320 = vperm.xlu2 %1386, %v286_v0   ;;  %v285_v6 = vld [vmem:[%s2209_s1 + $0x18] sm:$0xff]  ;;  %v296_v11 = vld [vmem:[%s2209_s1 + $0x70] sm:$0xff]  ;;  %v295_v12 = vld [vmem:[%s2209_s1 + $0x68] sm:$0xff]  ;;  %s1283_s16 = sshll.u32 %s276_s6, 1  ;;  %p1538_p11 = scmp.ne.s32.totalorder %s1536_s24, %s1537_s20 }
  0x18   : > { %426 = vperm.xlu0 %1389, %v284_v1   ;;  %310 = vperm.xlu1 %1385, %v284_v1   ;;  %v293_v9 = vld [vmem:[%s2209_s1 + $0x58] sm:$0xff]  ;;  %v282_v13 = vld [vmem:[%s2209_s1] sm:$0xff]  ;;  %v283_v14 = vld [vmem:[%s2209_s1 + $0x8] sm:$0xff]  ;;  %s278_s19 = scalar_lea.vmem %s2208_s0, %s1283_s16  ;;  %s1541_s6 = scalar_lea.hbm %s2215_s7, 4 }
  0x19   : > { %v297_v10 = vld [vmem:[%s2209_s1 + $0x78] sm:$0xff]  ;;  %v288_v15 = vld [vmem:[%s2209_s1 + $0x30] sm:$0xff]  ;;  %v291_v16 = vld [vmem:[%s2209_s1 + $0x48] sm:$0xff]  ;;  %p1539_p12 = pnand %p1538_p11, %p1667_p5  ;;  %p1543_p1 = scmp.lt.s32.totalorder %s1541_s6, %s1537_s20 }
  0x1a   : > { %v294_v17 = vld [vmem:[%s2209_s1 + $0x60] sm:$0xff]  ;;  %v565_v18 = vld [vmem:[%s2210_s2 + $0x70] sm:$0xff]  ;;  %v562_v19 = vld [vmem:[%s2210_s2 + $0x58] sm:$0xff] }
  0x1b   : > { %v563_v20 = vld [vmem:[%s2210_s2 + $0x60] sm:$0xff]  ;;  %v566_v21 = vld [vmem:[%s2210_s2 + $0x78] sm:$0xff]  ;;  %v557_v23 = vld [vmem:[%s2210_s2 + $0x30] sm:$0xff]  ;;  %p1540_p13 = pneg %p1539_p12  ;;  %p1544_p2 = por %p1543_p1, %p1542_p0 }
  0x1c   : > { %v561_v24 = vld [vmem:[%s2210_s2 + $0x50] sm:$0xff]  ;;  %v564_v25 = vld [vmem:[%s2210_s2 + $0x68] sm:$0xff]  ;;  %v559_v29 = vld [vmem:[%s2210_s2 + $0x40] sm:$0xff] }
  0x1d   : > { %v556_v27 = vld [vmem:[%s2210_s2 + $0x28] sm:$0xff]  ;;  %v281_v30 = vld [vmem:[%s278_s19] sm:$0xf]  ;;  %v558_v42 = vld [vmem:[%s2210_s2 + $0x38] sm:$0xff]  ;;  %s273_s19 = scalar_lea.vmem [#allocation3], %s1281_s15  ;;  %p1545_p3 = pnand %p1544_p2, %p1540_p13 }
  0x1e   : > { %v560_v28 = vld [vmem:[%s2210_s2 + $0x48] sm:$0xff]  ;;  %v379_v32 = vperm.slane %v281_v30, 0  ;;  %v380_v33 = vperm.slane %v281_v30, 2  ;;  %v481_v34 = vperm.slane %v281_v30, 1  ;;  %v482_v35 = vperm.slane %v281_v30, 3  ;;  %v551_v36 = vld [vmem:[%s2210_s2] sm:$0xff] }
  0x1f   : > { %325 = vperm.xlu2 %1386, %v287_v4   ;;  %v555_v41 = vld [vmem:[%s2210_s2 + $0x20] sm:$0xff]  ;;  %v744_v52 = vld [vmem:[%s2212_s4 + $0x8] sm:$0xff]  ;;  %v554_v53 = vld [vmem:[%s2210_s2 + $0x18] sm:$0xff]  ;;  %s1215_s21 = sshll.u32 %s273_s19, 4  ;;  %s1216_s21 = int_to_ptr.vmem [resolvable:$true] %s1215_s21 }
  0x20   : > { %446 = vperm.xlu0 %1389, %v289_v5   ;;  %315 = vperm.xlu1 %1385, %v285_v6   ;;  %v1773_v37 = vperm.slane %v379_v32, 0  ;;  %v1775_v38 = vperm.slane %v380_v33, 0  ;;  %v1777_v39 = vperm.slane %v481_v34, 1  ;;  %v1779_v40 = vperm.slane %v482_v35, 1  ;;  %v553_v54 = vld [vmem:[%s2210_s2 + $0x10] sm:$0xff]  ;;  %v747_v58 = vld [vmem:[%s2212_s4 + $0x20] sm:$0xff] }
  0x21   : > { %v743_v59 = vld [vmem:[%s2212_s4] sm:$0xff]  ;;  %v552_v60 = vld [vmem:[%s2210_s2 + $0x8] sm:$0xff] }
  0x22   : > { %v756_v32 = vld [vmem:[%s2212_s4 + $0x68] sm:$0xff]  ;;  %v751_v34 = vld [vmem:[%s2212_s4 + $0x40] sm:$0xff] }
  0x23   : > { %v752_v33 = vld [vmem:[%s2212_s4 + $0x48] sm:$0xff] }
  0x27   : > { %340 = vperm.xlu2 %1386, %v290_v7  }
  0x28   : > { %458 = vperm.xlu0 %1389, %v292_v8   ;;  %335 = vperm.xlu1 %1385, %v289_v5  }
  0x2f   : > { %355 = vperm.xlu2 %1386, %v293_v9  }
  0x30   : > { %478 = vperm.xlu0 %1389, %v297_v10   ;;  %350 = vperm.xlu1 %1385, %v292_v8   ;;  %v745_v8 = vld [vmem:[%s2212_s4 + $0x10] sm:$0xff] }
  0x37   : > { %370 = vperm.xlu2 %1386, %v296_v11  }
  0x38   : > { %1390 = vset.pattern.permute.xlu0 %v1586_v3  ;;  %365 = vperm.xlu1 %1385, %v295_v12  }
  0x39   : > { %300 = vperm.xlu0 %1390, %v282_v13  }
  0x3f   : > { %1388 = vset.pattern.permute.xlu2 %v1585_v2 }
  0x40   : > { %1387 = vset.pattern.permute.xlu1 %v1585_v2  ;;  %422 = vperm.xlu2 %1388, %v283_v14  }
  0x41   : > { %305 = vperm.xlu0 %1390, %v283_v14   ;;  %418 = vperm.xlu1 %1387, %v282_v13  }
  0x48   : > { %434 = vperm.xlu2 %1388, %v286_v0  }
  0x49   : > { %330 = vperm.xlu0 %1390, %v288_v15   ;;  %430 = vperm.xlu1 %1387, %v285_v6   ;;  %v750_v6 = vld [vmem:[%s2212_s4 + $0x38] sm:$0xff] }
  0x50   : > { %442 = vperm.xlu2 %1388, %v288_v15  }
  0x51   : > { %345 = vperm.xlu0 %1390, %v291_v16   ;;  %438 = vperm.xlu1 %1387, %v287_v4  }
  0x58   : > { %454 = vperm.xlu2 %1388, %v291_v16  }
  0x59   : > { %360 = vperm.xlu0 %1390, %v294_v17   ;;  %450 = vperm.xlu1 %1387, %v290_v7   ;;  %v746_v7 = vld [vmem:[%s2212_s4 + $0x18] sm:$0xff] }
  0x60   : > { %474 = vperm.xlu2 %1388, %v296_v11  }
  0x61   : > { %375 = vperm.xlu0 %1390, %v297_v10   ;;  %462 = vperm.xlu1 %1387, %v293_v9  }
  0x68   : > { %470 = vperm.xlu2 %1388, %v295_v12  }
  0x69   : > { %639 = vperm.xlu0 %1390, %v565_v18   ;;  %466 = vperm.xlu1 %1387, %v294_v17  }
  0x70   : > { %1392 = vset.pattern.permute.xlu2 %v1586_v3 }
  0x71   : > { %624 = vperm.xlu0 %1390, %v562_v19   ;;  %1391 = vset.pattern.permute.xlu1 %v1586_v3  ;;  %v1741_v22 = vpop.permute.xlu2 %320 }
  0x72   : > { %629 = vperm.xlu2 %1392, %v563_v20   ;;  %644 = vperm.xlu1 %1391, %v566_v21   ;;  %v393_v16 = vmul.f32 %v1773_v37, %v1741_v22  ;;  %v394_v17 = vmul.f32 %v1775_v38, %v1741_v22  ;;  %v749_v22 = vld [vmem:[%s2212_s4 + $0x30] sm:$0xff] }
  0x79   : > { %599 = vperm.xlu0 %1390, %v557_v23   ;;  %v1754_v26 = vpop.permute.xlu2 %325  ;;  %v753_v23 = vld [vmem:[%s2212_s4 + $0x50] sm:$0xff] }
  0x7a   : > { %619 = vperm.xlu2 %1392, %v561_v24   ;;  %634 = vperm.xlu1 %1391, %v564_v25  }
  0x81   : > { %594 = vperm.xlu0 %1390, %v556_v27   ;;  %v1768_v31 = vpop.permute.xlu2 %340  ;;  %v748_v27 = vld [vmem:[%s2212_s4 + $0x28] sm:$0xff] }
  0x82   : > { %614 = vperm.xlu2 %1392, %v560_v28   ;;  %609 = vperm.xlu1 %1391, %v559_v29  }
  0x89   : > { %569 = vperm.xlu0 %1390, %v551_v36   ;;  %v1787_v43 = vpop.permute.xlu2 %355 }
  0x8a   : > { %v427_v44 = vpop.permute.xlu0 %426  ;;  %v311_v45 = vpop.permute.xlu1 %310  ;;  %589 = vperm.xlu2 %1392, %v555_v41   ;;  %604 = vperm.xlu1 %1391, %v558_v42  }
  0x8b   : > { %v491_v46 = vmul.f32 %v1777_v39, %v427_v44  ;;  %v492_v47 = vmul.f32 %v1779_v40, %v427_v44  ;;  %v389_v48 = vmul.f32 %v1773_v37, %v311_v45  ;;  %v390_v49 = vmul.f32 %v1775_v38, %v311_v45 }
  0x8d   : > { %v1793_v50 = vadd.f32 %v491_v46, %v389_v48  ;;  %v1795_v51 = vadd.f32 %v492_v47, %v390_v49 }
  0x91   : > { %766 = vperm.xlu0 %1390, %v744_v52   ;;  %v1806_v55 = vpop.permute.xlu2 %370 }
  0x92   : > { %v447_v56 = vpop.permute.xlu0 %446  ;;  %v1808_v57 = vpop.permute.xlu1 %315  ;;  %584 = vperm.xlu2 %1392, %v554_v53   ;;  %579 = vperm.xlu1 %1391, %v553_v54   ;;  %v1017_v53 = vld [vmem:[%s2213_s5] sm:$0xff] }
  0x93   : > { %v501_v61 = vmul.f32 %v1777_v39, %v447_v56  ;;  %v502_v62 = vmul.f32 %v1779_v40, %v447_v56 }
  0x99   : > { %781 = vperm.xlu0 %1390, %v747_v58   ;;  %v755_v58 = vld [vmem:[%s2212_s4 + $0x60] sm:$0xff] }
  0x9a   : > { %v459_v63 = vpop.permute.xlu0 %458  ;;  %v336_v0 = vpop.permute.xlu1 %335  ;;  %761 = vperm.xlu2 %1392, %v743_v59   ;;  %574 = vperm.xlu1 %1391, %v552_v60   ;;  %v754_v59 = vld [vmem:[%s2212_s4 + $0x58] sm:$0xff] }
  0x9b   : > { %v399_v1 = vmul.f32 %v1773_v37, %v336_v0  ;;  %v400_v2 = vmul.f32 %v1775_v38, %v336_v0  ;;  %v423_v3 = vpop.permute.xlu2 %422  ;;  %v507_v11 = vmul.f32 %v1777_v39, %v459_v63  ;;  %v508_v12 = vmul.f32 %v1779_v40, %v459_v63 }
  0x9c   : > { %v489_v35 = vmul.f32 %v1777_v39, %v423_v3  ;;  %v490_v36 = vmul.f32 %v1779_v40, %v423_v3 }
  0x9d   : > { %v1823_v4 = vadd.f32 %v501_v61, %v399_v1  ;;  %v1825_v5 = vadd.f32 %v502_v62, %v400_v2  ;;  %v391_v1 = vmul.f32 %v1773_v37, %v1808_v57  ;;  %v392_v2 = vmul.f32 %v1775_v38, %v1808_v57 }
  0xa1   : > { %796 = vperm.xlu0 %1390, %v750_v6  }
  0xa2   : > { %v1836_v9 = vpop.permute.xlu0 %478  ;;  %v351_v10 = vpop.permute.xlu1 %350  ;;  %776 = vperm.xlu2 %1392, %v746_v7   ;;  %771 = vperm.xlu1 %1391, %v745_v8   ;;  %v1020_v7 = vld [vmem:[%s2213_s5 + $0x18] sm:$0xff] }
  0xa3   : > { %v405_v13 = vmul.f32 %v1773_v37, %v351_v10  ;;  %v406_v14 = vmul.f32 %v1775_v38, %v351_v10  ;;  %v435_v15 = vpop.permute.xlu2 %434  ;;  %v758_v8 = vld [vmem:[%s2212_s4 + $0x78] sm:$0xff]  ;;  %v757_v10 = vld [vmem:[%s2212_s4 + $0x70] sm:$0xff] }
  0xa4   : > { %v495_v18 = vmul.f32 %v1777_v39, %v435_v15  ;;  %v496_v19 = vmul.f32 %v1779_v40, %v435_v15  ;;  %v1023_v15 = vld [vmem:[%s2213_s5 + $0x30] sm:$0xff] }
  0xa5   : > { %v1848_v20 = vadd.f32 %v507_v11, %v405_v13  ;;  %v1850_v21 = vadd.f32 %v508_v12, %v406_v14 }
  0xa6   : > { %v1855_v24 = vadd.f32 %v495_v18, %v393_v16  ;;  %v1857_v25 = vadd.f32 %v496_v19, %v394_v17  ;;  %v1019_v16 = vld [vmem:[%s2213_s5 + $0x10] sm:$0xff]  ;;  %v1018_v17 = vld [vmem:[%s2213_s5 + $0x8] sm:$0xff] }
  0xa9   : > { %811 = vperm.xlu0 %1390, %v753_v23   ;;  %v1026_v23 = vld [vmem:[%s2213_s5 + $0x48] sm:$0xff] }
  0xaa   : > { %v1865_v28 = vpop.permute.xlu1 %365  ;;  %791 = vperm.xlu2 %1392, %v749_v22   ;;  %786 = vperm.xlu1 %1391, %v748_v27   ;;  %v1022_v27 = vld [vmem:[%s2213_s5 + $0x28] sm:$0xff] }
  0xab   : > { %v1867_v29 = vpop.permute.xlu2 %442  ;;  %v301_v30 = vpop.permute.xlu0 %300 }
  0xac   : > { %v385_v41 = vmul.f32 %v1773_v37, %v301_v30  ;;  %v386_v42 = vmul.f32 %v1775_v38, %v301_v30  ;;  %v1021_v30 = vld [vmem:[%s2213_s5 + $0x20] sm:$0xff] }
  0xb1   : > { %826 = vperm.xlu0 %1390, %v756_v32  }
  0xb2   : > { %806 = vperm.xlu2 %1392, %v752_v33   ;;  %801 = vperm.xlu1 %1391, %v751_v34   ;;  %v1029_v34 = vld [vmem:[%s2213_s5 + $0x60] sm:$0xff] }
  0xb3   : > { %v1882_v44 = vpop.permute.xlu2 %454  ;;  %v306_v45 = vpop.permute.xlu0 %305 }
  0xb4   : > { %v387_v46 = vmul.f32 %v1773_v37, %v306_v45  ;;  %v388_v47 = vmul.f32 %v1775_v38, %v306_v45  ;;  %v419_v48 = vpop.permute.xlu1 %418 }
  0xb5   : > { %v487_v49 = vmul.f32 %v1777_v39, %v419_v48  ;;  %v488_v52 = vmul.f32 %v1779_v40, %v419_v48 }
  0xb6   : > { %v1891_v54 = vadd.f32 %v489_v35, %v387_v46  ;;  %v1893_v56 = vadd.f32 %v490_v36, %v388_v47  ;;  %v1025_v35 = vld [vmem:[%s2213_s5 + $0x40] sm:$0xff]  ;;  %v1024_v36 = vld [vmem:[%s2213_s5 + $0x38] sm:$0xff] }
  0xb7   : > { %v1901_v60 = vadd.f32 %v487_v49, %v385_v41  ;;  %v1903_v61 = vadd.f32 %v488_v52, %v386_v42  ;;  %v1032_v52 = vld [vmem:[%s2213_s5 + $0x78] sm:$0xff] }
  0xb9   : > { %1035 = vperm.xlu0 %1390, %v1017_v53   ;;  %v413_v53 = vmul.f32 %v1773_v37, %v1806_v55 }
  0xba   : > { %821 = vperm.xlu2 %1392, %v755_v58   ;;  %816 = vperm.xlu1 %1391, %v754_v59  }
  0xbb   : > { %v475_v62 = vpop.permute.xlu2 %474  ;;  %v1905_v63 = vpop.permute.xlu0 %330 }
  0xbc   : > { %v431_v0 = vpop.permute.xlu1 %430  ;;  %v515_v46 = vmul.f32 %v1777_v39, %v475_v62  ;;  %v516_v47 = vmul.f32 %v1779_v40, %v475_v62  ;;  %v1027_v62 = vld [vmem:[%s2213_s5 + $0x50] sm:$0xff] }
  0xbd   : > { %v493_v3 = vmul.f32 %v1777_v39, %v431_v0  ;;  %v494_v6 = vmul.f32 %v1779_v40, %v431_v0  ;;  %v1028_v0 = vld [vmem:[%s2213_s5 + $0x58] sm:$0xff] }
  0xbf   : > { %v1922_v11 = vadd.f32 %v493_v3, %v391_v1  ;;  %v1924_v12 = vadd.f32 %v494_v6, %v392_v2  ;;  %v407_v1 = vmul.f32 %v1773_v37, %v1787_v43  ;;  %v408_v2 = vmul.f32 %v1775_v38, %v1787_v43 }
  0xc0   : > { %v414_v3 = vmul.f32 %v1775_v38, %v1806_v55  ;;  %v518_v6 = vmul.f32 %v1779_v40, %v1836_v9 }
  0xc1   : > { %1050 = vperm.xlu0 %1390, %v1020_v7  }
  0xc2   : > { %836 = vperm.xlu2 %1392, %v758_v8   ;;  %831 = vperm.xlu1 %1391, %v757_v10   ;;  %v547_v10 = vadd.f32 %v515_v46, %v413_v53  ;;  %v505_v46 = vmul.f32 %v1777_v39, %v1882_v44 }
  0xc3   : > { %v346_v57 = vpop.permute.xlu0 %345  ;;  %v1928_v14 = vpop.permute.xlu2 %470 }
  0xc4   : > { %v1926_v13 = vpop.permute.xlu1 %438  ;;  %v404_v55 = vmul.f32 %v1775_v38, %v346_v57  ;;  %v513_v53 = vmul.f32 %v1777_v39, %v1928_v14 }
  0xc9   : > { %1065 = vperm.xlu0 %1390, %v1023_v15   ;;  %v548_v15 = vadd.f32 %v516_v47, %v414_v3 }
  0xca   : > { %1045 = vperm.xlu2 %1392, %v1019_v16   ;;  %1040 = vperm.xlu1 %1391, %v1018_v17   ;;  %v403_v17 = vmul.f32 %v1773_v37, %v346_v57 }
  0xcb   : > { %v1939_v18 = vpop.permute.xlu0 %360 }
  0xcc   : > { %v1941_v19 = vpop.permute.xlu1 %450  ;;  %v1946_v22 = vpop.permute.xlu2 %629  ;;  %v409_v57 = vmul.f32 %v1773_v37, %v1939_v18 }
  0xd1   : > { %1080 = vperm.xlu0 %1390, %v1026_v23  }
  0xd2   : > { %1060 = vperm.xlu2 %1392, %v1022_v27   ;;  %1055 = vperm.xlu1 %1391, %v1021_v30  }
  0xd3   : > { %v376_v32 = vpop.permute.xlu0 %375 }
  0xd4   : > { %v463_v33 = vpop.permute.xlu1 %462  ;;  %v620_v41 = vpop.permute.xlu2 %619  ;;  %v415_v58 = vmul.f32 %v1773_v37, %v376_v32  ;;  %v416_v7 = vmul.f32 %v1775_v38, %v376_v32 }
  0xd5   : > { %v509_v48 = vmul.f32 %v1777_v39, %v463_v33  ;;  %v510_v49 = vmul.f32 %v1779_v40, %v463_v33  ;;  %v667_v59 = vadd.f32 %v620_v41, %v1848_v20  ;;  %v517_v20 = vmul.f32 %v1777_v39, %v1836_v9 }
  0xd6   : > { %v668_v8 = vadd.f32 %v620_v41, %v1850_v21  ;;  %v550_v41 = vadd.f32 %v518_v6, %v416_v7 }
  0xd7   : > { %v541_v16 = vadd.f32 %v509_v48, %v407_v1  ;;  %v542_v43 = vadd.f32 %v510_v49, %v408_v2  ;;  %1393 = vtanh.f32 %v667_v59  ;;  %v549_v30 = vadd.f32 %v517_v20, %v415_v58 }
  0xd8   : > { %1395 = vtanh.f32 %v668_v8  ;;  %v506_v48 = vmul.f32 %v1779_v40, %v1882_v44  ;;  %v410_v49 = vmul.f32 %v1775_v38, %v1939_v18  ;;  %v537_v59 = vadd.f32 %v505_v46, %v403_v17 }
  0xd9   : > { %1095 = vperm.xlu0 %1390, %v1029_v34   ;;  %v514_v18 = vmul.f32 %v1779_v40, %v1928_v14  ;;  %v411_v1 = vmul.f32 %v1773_v37, %v1865_v28  ;;  %v412_v20 = vmul.f32 %v1775_v38, %v1865_v28  ;;  %v395_v14 = vmul.f32 %v1773_v37, %v1754_v26 }
  0xda   : > { %1075 = vperm.xlu2 %1392, %v1025_v35   ;;  %1070 = vperm.xlu1 %1391, %v1024_v36   ;;  %v497_v17 = vmul.f32 %v1777_v39, %v1926_v13 }
  0xdb   : > { %v640_v42 = vpop.permute.xlu0 %639 }
  0xdc   : > { %v467_v45 = vpop.permute.xlu1 %466  ;;  %v615_v23 = vpop.permute.xlu2 %614  ;;  %v675_v9 = vadd.f32 %v640_v42, %v547_v10  ;;  %v676_v35 = vadd.f32 %v640_v42, %v548_v15  ;;  %v1031_v42 = vld [vmem:[%s2213_s5 + $0x70] sm:$0xff] }
  0xdd   : > { %v511_v32 = vmul.f32 %v1777_v39, %v467_v45  ;;  %v512_v36 = vmul.f32 %v1779_v40, %v467_v45  ;;  %v1030_v45 = vld [vmem:[%s2213_s5 + $0x68] sm:$0xff]  ;;  %v1394_v44 = vpop.eup %1393  ;;  %v665_v2 = vadd.f32 %v615_v23, %v537_v59 }
  0xde   : > { %v1396_v3 = vpop.eup %1395 }
  0xdf   : > { %v543_v58 = vadd.f32 %v511_v32, %v409_v57 }
  0xe1   : > { %1110 = vperm.xlu0 %1390, %v1032_v52   ;;  %v671_v10 = vadd.f32 %v1946_v22, %v543_v58 }
  0xe2   : > { %1090 = vperm.xlu2 %1392, %v1028_v0   ;;  %1085 = vperm.xlu1 %1391, %v1027_v62   ;;  %v544_v0 = vadd.f32 %v512_v36, %v410_v49  ;;  %v538_v62 = vadd.f32 %v506_v48, %v404_v55  ;;  %v498_v55 = vmul.f32 %v1779_v40, %v1926_v13 }
  0xe3   : > { %v625_v27 = vpop.permute.xlu0 %624 }
  0xe4   : > { %v669_v33 = vadd.f32 %v625_v27, %v541_v16  ;;  %v670_v21 = vadd.f32 %v625_v27, %v542_v43  ;;  %v645_v34 = vpop.permute.xlu1 %644  ;;  %v666_v6 = vadd.f32 %v615_v23, %v538_v62  ;;  %v545_v16 = vadd.f32 %v513_v53, %v411_v1  ;;  %v590_v23 = vpop.permute.xlu2 %589 }
  0xe5   : > { %v677_v47 = vadd.f32 %v645_v34, %v549_v30  ;;  %v678_v52 = vadd.f32 %v645_v34, %v550_v41  ;;  %v672_v28 = vadd.f32 %v1946_v22, %v544_v0  ;;  %v546_v27 = vadd.f32 %v514_v18, %v412_v20 }
  0xe6   : > { %1397 = vtanh.f32 %v669_v33  ;;  %v503_v34 = vmul.f32 %v1777_v39, %v1941_v19  ;;  %v396_v22 = vmul.f32 %v1775_v38, %v1754_v26  ;;  %v401_v41 = vmul.f32 %v1773_v37, %v1768_v31 }
  0xe7   : > { %1399 = vtanh.f32 %v670_v21  ;;  %v655_v46 = vadd.f32 %v590_v23, %v1855_v24  ;;  %v656_v48 = vadd.f32 %v590_v23, %v1857_v25  ;;  %v397_v24 = vmul.f32 %v1773_v37, %v1905_v63 }
  0xe8   : > { %1401 = vtanh.f32 %v675_v9  ;;  %v398_v18 = vmul.f32 %v1775_v38, %v1905_v63  ;;  %v500_v37 = vmul.f32 %v1779_v40, %v1867_v29 }
  0xe9   : > { %1403 = vtanh.f32 %v676_v35  ;;  %v504_v35 = vmul.f32 %v1779_v40, %v1941_v19 }
  0xea   : > { %1405 = vtanh.f32 %v677_v47  ;;  %1105 = vperm.xlu2 %1392, %v1031_v42   ;;  %1100 = vperm.xlu1 %1391, %v1030_v45   ;;  %v402_v47 = vmul.f32 %v1775_v38, %v1768_v31  ;;  %v530_v42 = vadd.f32 %v498_v55, %v396_v22  ;;  %v535_v45 = vadd.f32 %v503_v34, %v401_v41 }
  0xeb   : > { %1407 = vtanh.f32 %v678_v52  ;;  %v2018_v7 = vpop.permute.xlu0 %599  ;;  %v529_v52 = vadd.f32 %v497_v17, %v395_v14  ;;  %v532_v14 = vadd.f32 %v500_v37, %v398_v18  ;;  %v1323_v18 = vld [vmem:[%s2211_s3 + $0x18] sm:$0xff] }
  0xec   : > { %v1398_v8 = vpop.eup %1397  ;;  %v635_v15 = vpop.permute.xlu1 %634  ;;  %1409 = vtanh.f32 %v665_v2  ;;  %v536_v53 = vadd.f32 %v504_v35, %v402_v47  ;;  %v499_v2 = vmul.f32 %v1777_v39, %v1867_v29 }
  0xed   : > { %v1400_v43 = vpop.eup %1399  ;;  %v673_v9 = vadd.f32 %v635_v15, %v545_v16  ;;  %v2028_v32 = vpack.c.bf16 %v1398_v8, %v1394_v44  ;;  %1411 = vtanh.f32 %v666_v6  ;;  %v674_v13 = vadd.f32 %v635_v15, %v546_v27  ;;  %v585_v27 = vpop.permute.xlu2 %584 }
  0xee   : > { %v1402_v30 = vpop.eup %1401  ;;  %v2030_v33 = vpack.c.bf16 %v1400_v43, %v1396_v3  ;;  %1413 = vtanh.f32 %v671_v10  ;;  %v531_v6 = vadd.f32 %v499_v2, %v397_v24  ;;  %v660_v39 = vadd.f32 %v2018_v7, %v532_v14  ;;  %v1324_v24 = vld [vmem:[%s2211_s3 + $0x20] sm:$0xff] }
  0xef   : > { %v1404_v21 = vpop.eup %1403  ;;  %1415 = vtanh.f32 %v672_v28 }
  0xf0   : > { %v1406_v36 = vpop.eup %1405  ;;  %1417 = vtanh.f32 %v673_v9  ;;  %v659_v10 = vadd.f32 %v2018_v7, %v531_v6 }
  0xf1   : > { %v1408_v57 = vpop.eup %1407  ;;  %v741_v19 = vpack.c.bf16 %v1406_v36, %v1402_v30  ;;  %1419 = vtanh.f32 %v674_v13 }
  0xf2   : > { %v742_v49 = vpack.c.bf16 %v1408_v57, %v1404_v21  ;;  %v1410_v58 = vpop.eup %1409  ;;  %1421 = vtanh.f32 %v655_v46  ;;  %v654_v21 = vadd.f32 %v585_v27, %v1924_v12 }
  0xf3   : > { %887 = vmatpush.bf16.msra.mxu0 %v741_v19  ;;  %1328 = vmatpush.bf16.msra.mxu2 %v741_v19  ;;  %v595_v26 = vpop.permute.xlu0 %594  ;;  %v1412_v44 = vpop.eup %1411  ;;  %1423 = vtanh.f32 %v656_v48 }
  0xf4   : > { %936 = vmatpush.bf16.msra.mxu1 %v742_v49  ;;  %1336 = vmatpush.bf16.msra.mxu3 %v742_v49  ;;  %v657_v31 = vadd.f32 %v595_v26, %v529_v52  ;;  %v658_v25 = vadd.f32 %v595_v26, %v530_v42  ;;  %v610_v59 = vpop.permute.xlu1 %609  ;;  %v1414_v1 = vpop.eup %1413 }
  0xf5   : > { %v663_v0 = vadd.f32 %v610_v59, %v535_v45  ;;  %v664_v62 = vadd.f32 %v610_v59, %v536_v53  ;;  %v1416_v3 = vpop.eup %1415  ;;  %v1322_v59 = vld [vmem:[%s2211_s3 + $0x10] sm:$0xff] }
  0xf6   : > { %1425 = vtanh.f32 %v657_v31  ;;  %v1418_v20 = vpop.eup %1417  ;;  %v1321_v31 = vld [vmem:[%s2211_s3 + $0x8] sm:$0xff] }
  0xf7   : > { %1427 = vtanh.f32 %v658_v25  ;;  %v1420_v8 = vpop.eup %1419  ;;  %v739_v38 = vpack.c.bf16 %v1418_v20, %v1414_v1  ;;  %v1325_v25 = vld [vmem:[%s2211_s3 + $0x28] sm:$0xff] }
  0xf8   : > { %1429 = vtanh.f32 %v663_v0  ;;  %v1422_v63 = vpop.eup %1421  ;;  %v740_v15 = vpack.c.bf16 %v1420_v8, %v1416_v3  ;;  %v1327_v0 = vld [vmem:[%s2211_s3 + $0x38] sm:$0xff] }
  0xf9   : > { %1431 = vtanh.f32 %v664_v62  ;;  %v1424_v16 = vpop.eup %1423  ;;  %888 = vmatpush.bf16.msra.mxu0 %v739_v38  ;;  %1329 = vmatpush.bf16.msra.mxu2 %v739_v38  ;;  %v762_v62 = vpop.permute.xlu2 %761 }
  0xfa   : > { %937 = vmatpush.bf16.msra.mxu1 %v740_v15  ;;  %1337 = vmatpush.bf16.msra.mxu3 %v740_v15  ;;  %1433 = vtanh.f32 %v659_v10 }
  0xfb   : > { %1435 = vtanh.f32 %v660_v39 }
  0xfc   : > { %v1426_v43 = vpop.eup %1425  ;;  %v605_v40 = vpop.permute.xlu1 %604 }
  0xfd   : > { %v1428_v29 = vpop.eup %1427  ;;  %v661_v17 = vadd.f32 %v605_v40, %v1823_v4  ;;  %v662_v55 = vadd.f32 %v605_v40, %v1825_v5  ;;  %v731_v28 = vpack.c.bf16 %v1426_v43, %v1422_v63  ;;  %889 = vmatpush.bf16.msra.mxu0 %v2028_v32  ;;  %1330 = vmatpush.bf16.msra.mxu2 %v2028_v32 }
  0xfe   : > { %v1430_v23 = vpop.eup %1429  ;;  %v732_v30 = vpack.c.bf16 %v1428_v29, %v1424_v16  ;;  %938 = vmatpush.bf16.msra.mxu1 %v2030_v33  ;;  %1338 = vmatpush.bf16.msra.mxu3 %v2030_v33  ;;  %v653_v5 = vadd.f32 %v585_v27, %v1922_v11  ;;  %v570_v33 = vpop.permute.xlu0 %569 }
  0xff   : > { %v1432_v9 = vpop.eup %1431  ;;  %v735_v7 = vpack.c.bf16 %v1410_v58, %v1430_v23  ;;  %1437 = vtanh.f32 %v661_v17  ;;  %v647_v46 = vadd.f32 %v570_v33, %v1901_v60  ;;  %v648_v57 = vadd.f32 %v570_v33, %v1903_v61  ;;  %v1320_v58 = vld [vmem:[%s2211_s3] sm:$0xff] }
 0x100   : > { %v736_v4 = vpack.c.bf16 %v1412_v44, %v1432_v9  ;;  %1439 = vtanh.f32 %v662_v55  ;;  %v1434_v34 = vpop.eup %1433  ;;  %v1326_v44 = vld [vmem:[%s2211_s3 + $0x30] sm:$0xff] }
 0x101   : > { %890 = vmatpush.bf16.msra.mxu0 %v735_v7  ;;  %1331 = vmatpush.bf16.msra.mxu2 %v735_v7  ;;  %v1436_v13 = vpop.eup %1435  ;;  %1441 = vtanh.f32 %v653_v5  ;;  %v777_v3 = vpop.permute.xlu2 %776 }
 0x102   : > { %939 = vmatpush.bf16.msra.mxu1 %v736_v4  ;;  %1339 = vmatpush.bf16.msra.mxu3 %v736_v4  ;;  %1443 = vtanh.f32 %v654_v21 }
 0x104   : > { %v580_v35 = vpop.permute.xlu1 %579 }
 0x105   : > { %v651_v32 = vadd.f32 %v580_v35, %v1793_v50  ;;  %v652_v36 = vadd.f32 %v580_v35, %v1795_v51  ;;  %v1438_v22 = vpop.eup %1437 }
 0x106   : > { %v1440_v41 = vpop.eup %1439  ;;  %v733_v11 = vpack.c.bf16 %v1438_v22, %v1434_v34  ;;  %v767_v1 = vpop.permute.xlu0 %766 }
 0x107   : > { %1445 = vtanh.f32 %v651_v32  ;;  %v734_v12 = vpack.c.bf16 %v1440_v41, %v1436_v13  ;;  %v1442_v47 = vpop.eup %1441 }
 0x108   : > { %1447 = vtanh.f32 %v652_v36  ;;  %891 = vmatpush.bf16.msra.mxu0 %v733_v11  ;;  %1332 = vmatpush.bf16.msra.mxu2 %v733_v11  ;;  %v1444_v50 = vpop.eup %1443 }
 0x109   : > { %940 = vmatpush.bf16.msra.mxu1 %v734_v12  ;;  %1340 = vmatpush.bf16.msra.mxu3 %v734_v12  ;;  %1449 = vtanh.f32 %v647_v46  ;;  %v2092_v6 = vpop.permute.xlu2 %791 }
 0x10a   : > { %1451 = vtanh.f32 %v648_v57 }
 0x10c   : > { %v575_v48 = vpop.permute.xlu1 %574  ;;  %892 = vmatpush.bf16.msra.mxu0 %v731_v28  ;;  %1333 = vmatpush.bf16.msra.mxu2 %v731_v28 }
 0x10d   : > { %v1446_v51 = vpop.eup %1445  ;;  %v649_v19 = vadd.f32 %v575_v48, %v1891_v54  ;;  %v650_v49 = vadd.f32 %v575_v48, %v1893_v56  ;;  %941 = vmatpush.bf16.msra.mxu1 %v732_v30  ;;  %1341 = vmatpush.bf16.msra.mxu3 %v732_v30 }
 0x10e   : > { %v1448_v52 = vpop.eup %1447  ;;  %v729_v60 = vpack.c.bf16 %v1442_v47, %v1446_v51  ;;  %v782_v37 = vpop.permute.xlu0 %781 }
 0x10f   : > { %1453 = vtanh.f32 %v649_v19  ;;  %v730_v61 = vpack.c.bf16 %v1444_v50, %v1448_v52  ;;  %v1450_v42 = vpop.eup %1449 }
 0x110   : > { %1455 = vtanh.f32 %v650_v49  ;;  %893 = vmatpush.bf16.msra.mxu0 %v729_v60  ;;  %1334 = vmatpush.bf16.msra.mxu2 %v729_v60  ;;  %v1452_v26 = vpop.eup %1451 }
 0x111   : > { %942 = vmatpush.bf16.msra.mxu1 %v730_v61  ;;  %1342 = vmatpush.bf16.msra.mxu3 %v730_v61  ;;  %v2102_v39 = vpop.permute.xlu2 %806 }
 0x114   : > { %v772_v2 = vpop.permute.xlu1 %771 }
 0x115   : > { %v1454_v45 = vpop.eup %1453 }
 0x116   : > { %v1456_v54 = vpop.eup %1455  ;;  %v727_v53 = vpack.c.bf16 %v1454_v45, %v1450_v42  ;;  %v2094_v14 = vpop.permute.xlu0 %796 }
 0x117   : > { %v728_v56 = vpack.c.bf16 %v1456_v54, %v1452_v26 }
 0x118   : > { %894 = vmatpush.bf16.msra.mxu0 %v727_v53  ;;  %1335 = vmatpush.bf16.msra.mxu2 %v727_v53 }
 0x119   : > { %943 = vmatpush.bf16.msra.mxu1 %v728_v56  ;;  %1343 = vmatpush.bf16.msra.mxu3 %v728_v56  ;;  %v2112_v27 = vpop.permute.xlu2 %821 }
 0x11b   : > { %895 = vmatmul.bf16.vlgmr.msra.gmra.mxu0 %v1320_v58  ;;  %915 = vmatmul.bf16.vlgmr.msra.gmra.mxu2 %v1324_v24 }
 0x11c   : > { %944 = vmatmul.bf16.vlgmr.msra.gmra.mxu1 %v1320_v58  ;;  %964 = vmatmul.bf16.vlgmr.msra.gmra.mxu3 %v1324_v24  ;;  %v787_v20 = vpop.permute.xlu1 %786 }
 0x11e   : > { %v2104_v40 = vpop.permute.xlu0 %811 }
 0x121   : > { %v2122_v34 = vpop.permute.xlu2 %836 }
 0x124   : > { %v2096_v63 = vpop.permute.xlu1 %801 }
 0x126   : > { %v2114_v30 = vpop.permute.xlu0 %826 }
 0x129   : > { %v1046_v46 = vpop.permute.xlu2 %1045 }
 0x12b   : > { %900 = vmatmul.bf16.gmra.mxu0 %v1321_v31  ;;  %920 = vmatmul.bf16.gmra.mxu2 %v1325_v25 }
 0x12c   : > { %949 = vmatmul.bf16.gmra.mxu1 %v1321_v31  ;;  %969 = vmatmul.bf16.gmra.mxu3 %v1325_v25  ;;  %v2108_v17 = vpop.permute.xlu1 %816 }
 0x12e   : > { %v1036_v13 = vpop.permute.xlu0 %1035 }
 0x134   : > { %v2120_v5 = vpop.permute.xlu1 %831 }
 0x136   : > { %v1051_v51 = vpop.permute.xlu0 %1050 }
 0x13b   : > { %905 = vmatmul.bf16.gmra.mxu0 %v1322_v59  ;;  %925 = vmatmul.bf16.gmra.mxu2 %v1326_v44 }
 0x13c   : > { %954 = vmatmul.bf16.gmra.mxu1 %v1322_v59  ;;  %974 = vmatmul.bf16.gmra.mxu3 %v1326_v44  ;;  %v1041_v33 = vpop.permute.xlu1 %1040  ;;  %v1061_v44 = vpop.permute.xlu2 %1060 }
 0x144   : > { %v2132_v42 = vpop.permute.xlu1 %1055 }
 0x14b   : > { %910 = vmatmul.bf16.gmra.mxu0 %v1323_v18  ;;  %930 = vmatmul.bf16.gmra.mxu2 %v1327_v0 }
 0x14c   : > { %959 = vmatmul.bf16.gmra.mxu1 %v1323_v18  ;;  %979 = vmatmul.bf16.gmra.mxu3 %v1327_v0 }
 0x198   : > { %v896_v8 = vpop.f32.mrf.mxu0 }
 0x199   : > { %v945_v38 = vpop.f32.mrf.mxu1  ;;  %v897_v41 = vadd.f32 %v896_v8, %v762_v62 }
 0x19a   : > { %v946_v11 = vadd.f32 %v945_v38, %v762_v62 }
 0x19b   : > { %1457 = vtanh.f32 %v897_v41 }
 0x19c   : > { %1459 = vtanh.f32 %v946_v11 }
 0x19e   : > { %v2098_v10 = vpop.f32.mrf.mxu2 }
 0x19f   : > { %v2100_v15 = vpop.f32.mrf.mxu3 }
 0x1a0   : > { %v898_v16 = vpop.f32.mrf.mxu0 }
 0x1a1   : > { %v947_v43 = vpop.f32.mrf.mxu1  ;;  %v899_v57 = vadd.f32 %v898_v16, %v767_v1  ;;  %v1458_v53 = vpop.eup %1457 }
 0x1a2   : > { %v948_v50 = vadd.f32 %v947_v43, %v767_v1  ;;  %v1460_v24 = vpop.eup %1459 }
 0x1a3   : > { %1461 = vtanh.f32 %v899_v57 }
 0x1a4   : > { %1463 = vtanh.f32 %v948_v50 }
 0x1a6   : > { %v2106_v29 = vpop.f32.mrf.mxu2 }
 0x1a7   : > { %v2110_v55 = vpop.f32.mrf.mxu3 }
 0x1a8   : > { %v901_v28 = vpop.f32.mrf.mxu0 }
 0x1a9   : > { %v950_v23 = vpop.f32.mrf.mxu1  ;;  %v902_v19 = vadd.f32 %v901_v28, %v772_v2  ;;  %v1462_v59 = vpop.eup %1461 }
 0x1aa   : > { %v951_v52 = vadd.f32 %v950_v23, %v772_v2  ;;  %v1464_v62 = vpop.eup %1463  ;;  %v1115_v38 = vmul.f32 %v1462_v59, %v1041_v33  ;;  %v1113_v23 = vmul.f32 %v1458_v53, %v1036_v13  ;;  %v1076_v53 = vpop.permute.xlu2 %1075 }
 0x1ab   : > { %1465 = vtanh.f32 %v902_v19  ;;  %v1116_v43 = vmul.f32 %v1464_v62, %v1041_v33  ;;  %v919_v33 = vadd.f32 %v2106_v29, %v2102_v39 }
 0x1ac   : > { %1467 = vtanh.f32 %v951_v52  ;;  %v1145_v41 = vadd.f32 %v1115_v38, %v1113_v23 }
 0x1ae   : > { %v2116_v9 = vpop.f32.mrf.mxu2 }
 0x1af   : > { %v2118_v7 = vpop.f32.mrf.mxu3  ;;  %v922_v29 = vadd.f32 %v2116_v9, %v2104_v40 }
 0x1b0   : > { %v903_v4 = vpop.f32.mrf.mxu0 }
 0x1b1   : > { %v952_v21 = vpop.f32.mrf.mxu1  ;;  %v904_v60 = vadd.f32 %v903_v4, %v777_v3  ;;  %v1466_v2 = vpop.eup %1465 }
 0x1b2   : > { %v953_v61 = vadd.f32 %v952_v21, %v777_v3  ;;  %v1066_v3 = vpop.permute.xlu0 %1065  ;;  %v1468_v8 = vpop.eup %1467  ;;  %v1117_v4 = vmul.f32 %v1466_v2, %v1046_v46 }
 0x1b3   : > { %1469 = vtanh.f32 %v904_v60  ;;  %v2144_v21 = vpop.permute.xlu1 %1070 }
 0x1b4   : > { %1471 = vtanh.f32 %v953_v61 }
 0x1b6   : > { %v2124_v35 = vpop.f32.mrf.mxu2 }
 0x1b7   : > { %v2126_v32 = vpop.f32.mrf.mxu3 }
 0x1b8   : > { %v906_v36 = vpop.f32.mrf.mxu0  ;;  %v973_v9 = vadd.f32 %v2126_v32, %v2108_v17 }
 0x1b9   : > { %v955_v22 = vpop.f32.mrf.mxu1  ;;  %v907_v26 = vadd.f32 %v906_v36, %v782_v37  ;;  %v1470_v16 = vpop.eup %1469  ;;  %v1114_v36 = vmul.f32 %v1460_v24, %v1036_v13  ;;  %v968_v13 = vadd.f32 %v2110_v55, %v2102_v39 }
 0x1ba   : > { %v956_v45 = vadd.f32 %v955_v22, %v782_v37  ;;  %v917_v37 = vadd.f32 %v2098_v10, %v2096_v63  ;;  %v1472_v28 = vpop.eup %1471  ;;  %v1118_v10 = vmul.f32 %v1468_v8, %v1046_v46  ;;  %v1119_v11 = vmul.f32 %v1470_v16, %v1051_v51  ;;  %v1081_v59 = vpop.permute.xlu0 %1080 }
 0x1bb   : > { %1473 = vtanh.f32 %v907_v26  ;;  %v1166_v50 = vadd.f32 %v1116_v43, %v1114_v36  ;;  %v1146_v46 = vadd.f32 %v1145_v41, %v1117_v4  ;;  %v1086_v43 = vpop.permute.xlu1 %1085 }
 0x1bc   : > { %1475 = vtanh.f32 %v956_v45 }
 0x1be   : > { %v2128_v12 = vpop.f32.mrf.mxu2 }
 0x1bf   : > { %v2130_v47 = vpop.f32.mrf.mxu3 }
 0x1c0   : > { %v908_v48 = vpop.f32.mrf.mxu0 }
 0x1c1   : > { %v957_v49 = vpop.f32.mrf.mxu1  ;;  %v909_v56 = vadd.f32 %v908_v48, %v787_v20  ;;  %v1120_v48 = vmul.f32 %v1472_v28, %v1051_v51 }
 0x1c2   : > { %v958_v31 = vadd.f32 %v957_v49, %v787_v20  ;;  %v966_v20 = vadd.f32 %v2100_v15, %v2096_v63 }
 0x1c3   : > { %1477 = vtanh.f32 %v909_v56  ;;  %v1167_v56 = vadd.f32 %v1166_v50, %v1118_v10  ;;  %v1096_v50 = vpop.permute.xlu0 %1095 }
 0x1c4   : > { %1479 = vtanh.f32 %v958_v31  ;;  %v971_v31 = vadd.f32 %v2118_v7, %v2104_v40  ;;  %v927_v7 = vadd.f32 %v2128_v12, %v2112_v27 }
 0x1c6   : > { %v2134_v54 = vpop.f32.mrf.mxu2 }
 0x1c7   : > { %v2136_v58 = vpop.f32.mrf.mxu3 }
 0x1c8   : > { %v911_v25 = vpop.f32.mrf.mxu0  ;;  %v978_v32 = vadd.f32 %v2136_v58, %v2114_v30  ;;  %v1091_v58 = vpop.permute.xlu2 %1090 }
 0x1c9   : > { %v912_v18 = vadd.f32 %v911_v25, %v2092_v6  ;;  %v960_v0 = vpop.f32.mrf.mxu1  ;;  %v1147_v25 = vadd.f32 %v1146_v46, %v1119_v11 }
 0x1ca   : > { %v961_v1 = vadd.f32 %v960_v0, %v2092_v6  ;;  %v1474_v6 = vpop.eup %1473 }
 0x1cb   : > { %1481 = vtanh.f32 %v912_v18  ;;  %v1476_v22 = vpop.eup %1475  ;;  %v1121_v61 = vmul.f32 %v1474_v6, %v2132_v42  ;;  %v924_v18 = vadd.f32 %v2124_v35, %v2108_v17 }
 0x1cc   : > { %1483 = vtanh.f32 %v961_v1  ;;  %v1478_v57 = vpop.eup %1477  ;;  %v1122_v51 = vmul.f32 %v1476_v22, %v2132_v42 }
 0x1cd   : > { %1485 = vtanh.f32 %v917_v37  ;;  %v1480_v60 = vpop.eup %1479  ;;  %v1123_v39 = vmul.f32 %v1478_v57, %v1061_v44  ;;  %v1148_v42 = vadd.f32 %v1147_v25, %v1121_v61  ;;  %v976_v37 = vadd.f32 %v2130_v47, %v2112_v27 }
 0x1ce   : > { %1487 = vtanh.f32 %v966_v20  ;;  %v931_v63 = vpop.f32.mrf.mxu2  ;;  %v1124_v0 = vmul.f32 %v1480_v60, %v1061_v44  ;;  %v929_v20 = vadd.f32 %v2134_v54, %v2114_v30 }
 0x1cf   : > { %v980_v19 = vpop.f32.mrf.mxu3  ;;  %v1149_v8 = vadd.f32 %v1148_v42, %v1123_v39  ;;  %v932_v47 = vadd.f32 %v931_v63, %v2120_v5 }
 0x1d0   : > { %v913_v15 = vpop.f32.mrf.mxu0  ;;  %v981_v6 = vadd.f32 %v980_v19, %v2120_v5 }
 0x1d1   : > { %v914_v49 = vadd.f32 %v913_v15, %v2094_v14  ;;  %v962_v52 = vpop.f32.mrf.mxu1  ;;  %v1482_v45 = vpop.eup %1481 }
 0x1d2   : > { %v963_v26 = vadd.f32 %v962_v52, %v2094_v14  ;;  %v1484_v24 = vpop.eup %1483  ;;  %v1168_v14 = vadd.f32 %v1167_v56, %v1120_v48  ;;  %v1125_v1 = vmul.f32 %v1482_v45, %v1066_v3 }
 0x1d3   : > { %1489 = vtanh.f32 %v914_v49  ;;  %v1486_v55 = vpop.eup %1485  ;;  %v1126_v2 = vmul.f32 %v1484_v24, %v1066_v3 }
 0x1d4   : > { %1491 = vtanh.f32 %v963_v26  ;;  %v1488_v62 = vpop.eup %1487  ;;  %v1169_v40 = vadd.f32 %v1168_v14, %v1122_v51  ;;  %v1150_v38 = vadd.f32 %v1149_v8, %v1125_v1  ;;  %v1129_v54 = vmul.f32 %v1486_v55, %v1076_v53 }
 0x1d5   : > { %1493 = vtanh.f32 %v919_v33  ;;  %v1130_v10 = vmul.f32 %v1488_v62, %v1076_v53 }
 0x1d6   : > { %1495 = vtanh.f32 %v968_v13  ;;  %v1170_v44 = vadd.f32 %v1169_v40, %v1124_v0  ;;  %v933_v3 = vpop.f32.mrf.mxu2  ;;  %v1106_v0 = vpop.permute.xlu2 %1105 }
 0x1d7   : > { %1497 = vtanh.f32 %v922_v29  ;;  %v982_v23 = vpop.f32.mrf.mxu3  ;;  %v934_v41 = vadd.f32 %v933_v3, %v2122_v34 }
 0x1d8   : > { %1499 = vtanh.f32 %v971_v31  ;;  %v1171_v27 = vadd.f32 %v1170_v44, %v1126_v2  ;;  %v1101_v31 = vpop.permute.xlu1 %1100 }
 0x1d9   : > { %v1490_v35 = vpop.eup %1489  ;;  %1501 = vtanh.f32 %v924_v18 }
 0x1da   : > { %v1492_v17 = vpop.eup %1491  ;;  %1503 = vtanh.f32 %v973_v9  ;;  %v1127_v12 = vmul.f32 %v1490_v35, %v2144_v21 }
 0x1db   : > { %v1494_v16 = vpop.eup %1493  ;;  %1505 = vtanh.f32 %v927_v7  ;;  %v1128_v28 = vmul.f32 %v1492_v17, %v2144_v21  ;;  %v983_v21 = vadd.f32 %v982_v23, %v2122_v34  ;;  %v1111_v7 = vpop.permute.xlu0 %1110 }
 0x1dc   : > { %v1496_v4 = vpop.eup %1495  ;;  %1507 = vtanh.f32 %v976_v37  ;;  %v1151_v36 = vadd.f32 %v1150_v38, %v1127_v12  ;;  %v1131_v15 = vmul.f32 %v1494_v16, %v1081_v59 }
 0x1dd   : > { %v1498_v30 = vpop.eup %1497  ;;  %1509 = vtanh.f32 %v929_v20  ;;  %v1172_v22 = vadd.f32 %v1171_v27, %v1128_v28  ;;  %v1132_v33 = vmul.f32 %v1496_v4, %v1081_v59 }
 0x1de   : > { %v1500_v11 = vpop.eup %1499  ;;  %1511 = vtanh.f32 %v978_v32  ;;  %v1152_v63 = vadd.f32 %v1151_v36, %v1129_v54  ;;  %v1133_v19 = vmul.f32 %v1498_v30, %v1086_v43  ;;  %v1188_v54 = vstv %s1187_s10 }
 0x1df   : > { %v1502_v57 = vpop.eup %1501  ;;  %1513 = vtanh.f32 %v932_v47  ;;  %v1173_v48 = vadd.f32 %v1172_v22, %v1130_v10  ;;  %v1134_v60 = vmul.f32 %v1500_v11, %v1086_v43  ;;  %v1197_v30 = vlaneseq }
 0x1e0   : > { %v1504_v5 = vpop.eup %1503  ;;  %1515 = vtanh.f32 %v981_v6  ;;  %v1153_v49 = vadd.f32 %v1152_v63, %v1131_v15  ;;  %v1135_v61 = vmul.f32 %v1502_v57, %v1091_v58 }
 0x1e1   : > { %v1506_v52 = vpop.eup %1505  ;;  %v1174_v13 = vadd.f32 %v1173_v48, %v1132_v33  ;;  %1517 = vtanh.f32 %v934_v41  ;;  %v1136_v53 = vmul.f32 %v1504_v5, %v1091_v58  ;;  %vm1199_vm1 = vcmp.lt.s32.totalorder %v1197_v30, 256 }
 0x1e2   : > { %v1508_v46 = vpop.eup %1507  ;;  %v1154_v26 = vadd.f32 %v1153_v49, %v1133_v19  ;;  %1519 = vtanh.f32 %v983_v21  ;;  %v1137_v29 = vmul.f32 %v1506_v52, %v1096_v50 }
 0x1e3   : > { %v1510_v45 = vpop.eup %1509  ;;  %v1175_v34 = vadd.f32 %v1174_v13, %v1134_v60  ;;  %v1138_v25 = vmul.f32 %v1508_v46, %v1096_v50 }
 0x1e4   : > { %v1512_v56 = vpop.eup %1511  ;;  %v1155_v51 = vadd.f32 %v1154_v26, %v1135_v61  ;;  %v1139_v59 = vmul.f32 %v1510_v45, %v1101_v31 }
 0x1e5   : > { %v1514_v24 = vpop.eup %1513  ;;  %v1176_v39 = vadd.f32 %v1175_v34, %v1136_v53  ;;  %v1140_v62 = vmul.f32 %v1512_v56, %v1101_v31 }
 0x1e6   : > { %v1516_v55 = vpop.eup %1515  ;;  %v1156_v14 = vadd.f32 %v1155_v51, %v1137_v29  ;;  %v1141_v1 = vmul.f32 %v1514_v24, %v1106_v0 }
 0x1e7   : > { %v1518_v18 = vpop.eup %1517  ;;  %v1177_v9 = vadd.f32 %v1176_v39, %v1138_v25  ;;  %v1142_v2 = vmul.f32 %v1516_v55, %v1106_v0 }
 0x1e8   : > { %v1520_v42 = vpop.eup %1519  ;;  %v1157_v40 = vadd.f32 %v1156_v14, %v1139_v59  ;;  %v1143_v8 = vmul.f32 %v1518_v18, %v1111_v7 }
 0x1e9   : > { %v1178_v37 = vadd.f32 %v1177_v9, %v1140_v62  ;;  %v1144_v44 = vmul.f32 %v1520_v42, %v1111_v7 }
 0x1ea   : > { %v1158_v35 = vadd.f32 %v1157_v40, %v1141_v1 }
 0x1eb   : > { %v1179_v20 = vadd.f32 %v1178_v37, %v1142_v2 }
 0x1ec   : > { %v1159_v17 = vadd.f32 %v1158_v35, %v1143_v8 }
 0x1ed   : > { %v1180_v32 = vadd.f32 %v1179_v20, %v1144_v44 }
 0x1ee   : > { %v1160_v38 = vrot.slane %v1159_v17, 4 }
 0x1ef   : > { %v1181_v12 = vrot.slane %v1180_v32, 4 }
 0x1f0   : > { %v1161_v3 = vadd.f32 %v1160_v38, %v1159_v17 }
 0x1f1   : > { %v1182_v16 = vadd.f32 %v1181_v12, %v1180_v32 }
 0x1f2   : > { %v1162_v43 = vrot.slane %v1161_v3, 2 }
 0x1f3   : > { %v1183_v27 = vrot.slane %v1182_v16, 2 }
 0x1f4   : > { %v1163_v47 = vadd.f32 %v1162_v43, %v1161_v3 }
 0x1f5   : > { %v1184_v28 = vadd.f32 %v1183_v27, %v1182_v16 }
 0x1f6   : > { %v1164_v23 = vrot.slane %v1163_v47, 1 }
 0x1f7   : > { %v1185_v4 = vrot.slane %v1184_v28, 1 }
 0x1f8   : > { %v1165_v6 = vadd.f32 %v1164_v23, %v1163_v47 }
 0x1f9   : > { %v1186_v36 = vadd.f32 %v1185_v4, %v1184_v28 }
 0x1fa   : > { %v1189_v10 = vadd.f32 %v1188_v54, %v1165_v6 }
 0x1fb   : > { %v1190_v58 = vadd.f32 %v1188_v54, %v1186_v36 }
 0x1fd   : > { %v1193_v22 = vrot.slane %v1190_v58, 7 }
 0x1ff   : > { %v1195_v41 = vsel %vm1194_vm0, %v1189_v10, %v1193_v22 }
 0x200   : > { %1201 = vst.msk [vmem:[%s273_s19] sm:$0x3] %vm1199_vm1, %v1195_v41 }
 0x201   : > { %1548 = shalt.err (!%p1545_p3)
}
 0x202   : > { %1344 = dma.vmem_to_hbm [thread:$0]  (%p1667_p5), %s1216_s21, 32, %s1218_s22, %s1203_s23  }
 0x203 PF: > { %p1350_p4 = scmp.ge.s32.totalorder %s1583_s29, 2  ;;  %s1229_s14 = sand.u32 1, %s1571_s26  }
 0x204   : > { %s1230_s15 = scalar_lea.sflag [#allocation4], %s1229_s14 }
 0x205   : > { %p1347_p7 = pnand %p1350_p4, %p1671_p6 }
 0x207   : > { %p1348_p8 = pneg %p1347_p7 }
 0x209   : > { %1566 = dma.done.wait (%p1348_p8), %s1230_s15, 32  }
 0x20a   : > { %1568 = vsyncadd (%p1348_p8), %s1230_s15, 4294967264  ;;  %p18_p9 = scmp.ge.s32.totalorder %s1653_s8, 4   ;;  %s2218_s26 = smov %s1575_s27 }
 0x20b   : > { %s2219_s27 = smov %s1579_s28  ;;  %s2220_s28 = smov %s1665_s11 }
 0x20c   : > { %s2221_s29 = smov %s1653_s8  ;;  %20 = sbr.rel (!%p18_p9) target bundleno = 5 (0x5), region = 83 }
 0x211   :  { %1236 = vsyncpa [#allocation4], 1 }
 0x212   :  { %1238 = vsyncpa [#allocation4 + $0x1], 1 }

</bundles_post_ra>
